<compile_context>
chip_gen: v7x
topology: tpu7x:2x2x1
jax: 0.10.0
libtpu: 0.0.40
codegen_flags: <defaults>
</compile_context>

<pallas_src>
import jax
import jax.numpy as jnp
from jax.experimental import pallas as pl
from jax.experimental.pallas import tpu as pltpu

EPS = 1e-5
NEG_INF = -1e30
LEAKY_SLOPE = 0.2

# Demo-sized tiles. For realistic N, sweep these against the per-generation VMEM
# budget (~64-100 MiB scoped on v5e/v6e, <= ~48 MiB on v7x's 64 MiB physical).
TILE_D = 128      # dst-node rows per attention step
TILE_S = 128      # src-node cols per attention step (softmax reduction tile)
TILE_N = 128      # node rows per projection / head step
VMEM_LIMIT_BYTES = 48 * 1024 * 1024   # safe on v5e/v6e/v7x, above scoped defaults


# ---------------------------------------------------------------------------
# Kernel 1: fused feature + attention projection   (h = x@W ; a = x@(W@att))
# ---------------------------------------------------------------------------
def _proj_kernel(x_ref, w_ref, watt_ref, h_ref, asrc_ref, adst_ref):
    xb = x_ref[...].astype(jnp.bfloat16)                       # bf16 MXU operand
    h = jnp.dot(xb, w_ref[...], preferred_element_type=jnp.float32)     # [TN, HID]
    a = jnp.dot(xb, watt_ref[...], preferred_element_type=jnp.float32)  # [TN, 2]
    h_ref[...] = h.astype(h_ref.dtype)                         # stored bf16
    asrc_ref[...] = a[:, 0:1].T                                # [1, TN] lane row
    adst_ref[...] = a[:, 1:2]                                  # [TN, 1]


def gat_projection(x, w_bf16, watt_bf16, *, tile_n=TILE_N):
    n, fin = x.shape
    hid = w_bf16.shape[1]
    tile_n = min(tile_n, n)
    assert n % tile_n == 0, (n, tile_n)
    return pl.pallas_call(
        _proj_kernel,
        out_shape=(jax.ShapeDtypeStruct((n, hid), jnp.bfloat16),
                   jax.ShapeDtypeStruct((1, n), jnp.float32),
                   jax.ShapeDtypeStruct((n, 1), jnp.float32)),
        grid=(n // tile_n,),
        in_specs=[pl.BlockSpec((tile_n, fin), lambda i: (i, 0)),
                  pl.BlockSpec((fin, hid), lambda i: (0, 0)),    # constant index map
                  pl.BlockSpec((fin, 2), lambda i: (0, 0))],
        out_specs=(pl.BlockSpec((tile_n, hid), lambda i: (i, 0)),
                   pl.BlockSpec((1, tile_n), lambda i: (0, i)),
                   pl.BlockSpec((tile_n, 1), lambda i: (i, 0))),
        compiler_params=pltpu.CompilerParams(dimension_semantics=("parallel",)),
    )(x, w_bf16, watt_bf16)


# ---------------------------------------------------------------------------
# Kernel 2: dst-tiled online-softmax attention + (bias+BN folded) + ReLU
# ---------------------------------------------------------------------------
def _attn_kernel(adst_ref, asrc_ref, adj_ref, h_ref, scale_ref, shift_ref,
                 xout_ref, m_ref, l_ref, acc_ref):
    j = pl.program_id(1)

    @pl.when(j == 0)
    def _():
        m_ref[...] = jnp.full_like(m_ref, -jnp.inf)
        l_ref[...] = jnp.zeros_like(l_ref)
        acc_ref[...] = jnp.zeros_like(acc_ref)

    # scores (all elementwise math in f32; bf16 only at the MXU boundary below)
    e = adst_ref[...] + asrc_ref[...]                    # [TD,1] + [1,TS] -> [TD,TS]
    e = jnp.maximum(e, LEAKY_SLOPE * e)                  # leaky-relu, 2 VPU ops
    edge = adj_ref[...].astype(jnp.float32) > 0.0        # int8 adjacency -> mask
    e = jnp.where(edge, e, NEG_INF)

    # online softmax with deferred normalization
    m_prev = m_ref[...]
    m_new = jnp.maximum(m_prev, jnp.max(e, axis=1, keepdims=True))
    # explicit zeroing keeps fully-masked tile rows correct (no spurious exp(0)=1)
    p = jnp.where(edge, jnp.exp(e - m_new), 0.0)
    alpha = jnp.exp(m_prev - m_new)
    l_ref[...] = alpha * l_ref[...] + jnp.sum(p, axis=1, keepdims=True)
    acc_ref[...] = alpha * acc_ref[...] + jnp.dot(
        p.astype(jnp.bfloat16), h_ref[...], preferred_element_type=jnp.float32)
    m_ref[...] = m_new

    @pl.when(j == pl.num_programs(1) - 1)
    def _():
        # deferred normalization: one reciprocal per dst row (EUP), guarded
        inv = pl.reciprocal(jnp.maximum(l_ref[...], 1e-30), approx=True)
        y = acc_ref[...] * inv
        y = y * scale_ref[...] + shift_ref[...]          # conv bias + BN (one FMA)
        xout_ref[...] = jnp.maximum(y, 0.0).astype(xout_ref.dtype)


def gat_attention(a_dst, a_src_row, adj_i8, h_bf16, scale, shift,
                  *, tile_d=TILE_D, tile_s=TILE_S):
    n, hid = h_bf16.shape
    tile_d = min(tile_d, n)
    tile_s = min(tile_s, n)
    assert n % tile_d == 0 and n % tile_s == 0, (n, tile_d, tile_s)
    return pl.pallas_call(
        _attn_kernel,
        out_shape=jax.ShapeDtypeStruct((n, hid), jnp.bfloat16),
        grid=(n // tile_d, n // tile_s),
        in_specs=[pl.BlockSpec((tile_d, 1), lambda i, j: (i, 0)),      # a_dst
                  pl.BlockSpec((1, tile_s), lambda i, j: (0, j)),      # a_src (row)
                  pl.BlockSpec((tile_d, tile_s), lambda i, j: (i, j)), # int8 adj tile
                  pl.BlockSpec((tile_s, hid), lambda i, j: (j, 0)),    # h src tile
                  pl.BlockSpec((1, hid), lambda i, j: (0, 0)),         # scale (const)
                  pl.BlockSpec((1, hid), lambda i, j: (0, 0))],        # shift (const)
        out_specs=pl.BlockSpec((tile_d, hid), lambda i, j: (i, 0)),
        scratch_shapes=[pltpu.VMEM((tile_d, 1), jnp.float32),    # running max m
                        pltpu.VMEM((tile_d, 1), jnp.float32),    # running sum l
                        pltpu.VMEM((tile_d, hid), jnp.float32)], # accumulator
        compiler_params=pltpu.CompilerParams(
            dimension_semantics=("parallel", "arbitrary"),
            vmem_limit_bytes=VMEM_LIMIT_BYTES),
    )(a_dst, a_src_row, adj_i8, h_bf16, scale, shift)


# ---------------------------------------------------------------------------
# Kernel 3: MLP head over cat(x, fair_emb)  (split-weight matmuls)
# ---------------------------------------------------------------------------
def _head_kernel(x_ref, emb_ref, w1a_ref, w1b_ref, b1_ref, w2_ref, b2_ref, o_ref):
    xb = x_ref[...].astype(jnp.bfloat16)
    eb = emb_ref[...].astype(jnp.bfloat16)
    hmid = (jnp.dot(xb, w1a_ref[...], preferred_element_type=jnp.float32)
            + jnp.dot(eb, w1b_ref[...], preferred_element_type=jnp.float32)
            + b1_ref[...])
    hmid = jnp.maximum(hmid, 0.0)
    o_ref[...] = (jnp.dot(hmid.astype(jnp.bfloat16), w2_ref[...],
                          preferred_element_type=jnp.float32) + b2_ref[...])


def mlp_head(x_bf16, emb, w1a, w1b, b1, w2, b2, *, tile_n=TILE_N):
    n, hid = x_bf16.shape
    embc = emb.shape[1]
    outc = w2.shape[1]
    tile_n = min(tile_n, n)
    assert n % tile_n == 0, (n, tile_n)
    # TODO(synk): OUT_C=4 is lane-sparse (masked vst); pad W2/out to 128 lanes
    #             wrapper-side if the writeback ever shows up in the trace.
    return pl.pallas_call(
        _head_kernel,
        out_shape=jax.ShapeDtypeStruct((n, outc), jnp.float32),
        grid=(n // tile_n,),
        in_specs=[pl.BlockSpec((tile_n, hid), lambda i: (i, 0)),
                  pl.BlockSpec((tile_n, embc), lambda i: (i, 0)),
                  pl.BlockSpec((hid, hid), lambda i: (0, 0)),
                  pl.BlockSpec((embc, hid), lambda i: (0, 0)),
                  pl.BlockSpec((1, hid), lambda i: (0, 0)),
                  pl.BlockSpec((hid, outc), lambda i: (0, 0)),
                  pl.BlockSpec((1, outc), lambda i: (0, 0))],
        out_specs=pl.BlockSpec((tile_n, outc), lambda i: (i, 0)),
        compiler_params=pltpu.CompilerParams(dimension_semantics=("parallel",)),
    )(x_bf16, emb, w1a, w1b, b1, w2, b2)


# ---------------------------------------------------------------------------
# Full forward
# ---------------------------------------------------------------------------
def fair_gat_forward(x, adj_i8, fair_emb, folded,
                     *, tile_d=TILE_D, tile_s=TILE_S, tile_n=TILE_N):
    cur = x
    for layer in folded["convs"]:
        h, a_src_row, a_dst = gat_projection(cur, layer["w"], layer["watt"],
                                             tile_n=tile_n)
        cur = gat_attention(a_dst, a_src_row, adj_i8, h,
                            layer["scale"], layer["shift"],
                            tile_d=tile_d, tile_s=tile_s)
    return mlp_head(cur, fair_emb, folded["w1a"], folded["w1b"], folded["b1"],
                    folded["w2"], folded["b2"], tile_n=tile_n)


# ---------------------------------------------------------------------------
# Host-side parameter folding (pure precompute, zero kernel cost).
# ---------------------------------------------------------------------------
def fold_params(raw):
    convs = []
    for layer in raw["convs"]:
        scale = layer["gamma"] / jnp.sqrt(layer["var"] + EPS)            # [1, C]
        shift = layer["beta"] - layer["mean"] * scale + layer["bias"] * scale
        att = jnp.concatenate([layer["att_src"], layer["att_dst"]], axis=1)  # [C, 2]
        watt = layer["w"] @ att                                          # [Fin, 2]
        convs.append(dict(w=layer["w"].astype(jnp.bfloat16),
                          watt=watt.astype(jnp.bfloat16),
                          scale=scale.astype(jnp.float32),
                          shift=shift.astype(jnp.float32)))
    return dict(convs=convs,
                w1a=raw["w1a"].astype(jnp.bfloat16),
                w1b=raw["w1b"].astype(jnp.bfloat16),
                b1=raw["b1"].astype(jnp.float32),
                w2=raw["w2"].astype(jnp.bfloat16),
                b2=raw["b2"].astype(jnp.float32))


# ---------------------------------------------------------------------------
# Pure-JAX references
# ---------------------------------------------------------------------------
def fair_gat_kernel_math_reference(x, adj_i8, fair_emb, folded):
    """Mirrors the kernel math (folded params, bf16 dot boundaries, f32 elsewhere)."""
    bf = jnp.bfloat16
    edge = adj_i8 > 0
    cur = x
    for layer in folded["convs"]:
        xb = cur.astype(bf)
        h = jnp.dot(xb, layer["w"], preferred_element_type=jnp.float32)
        a = jnp.dot(xb, layer["watt"], preferred_element_type=jnp.float32)
        e = a[:, 1:2] + a[:, 0:1].T
        e = jnp.maximum(e, LEAKY_SLOPE * e)
        e = jnp.where(edge, e, NEG_INF)
        e = e - jnp.max(e, axis=1, keepdims=True)
        p = jnp.where(edge, jnp.exp(e), 0.0)
        num = jnp.dot(p.astype(bf), h.astype(bf), preferred_element_type=jnp.float32)
        y = num / jnp.maximum(jnp.sum(p, axis=1, keepdims=True), 1e-30)
        y = y * layer["scale"] + layer["shift"]
        cur = jnp.maximum(y, 0.0)
    xb = cur.astype(bf)
    hmid = (jnp.dot(xb, folded["w1a"], preferred_element_type=jnp.float32)
            + jnp.dot(fair_emb.astype(bf), folded["w1b"],
                      preferred_element_type=jnp.float32)
            + folded["b1"])
    hmid = jnp.maximum(hmid, 0.0)
    return (jnp.dot(hmid.astype(bf), folded["w2"],
                    preferred_element_type=jnp.float32) + folded["b2"])


def fair_gat_module_reference(x, adj, fair_emb, raw):
    """Exact module semantics (f32, unfolded)."""
    for layer in raw["convs"]:
        h = x @ layer["w"]
        a_src = h @ layer["att_src"]
        a_dst = h @ layer["att_dst"]
        e = a_dst + a_src.T
        e = jnp.where(e > 0, e, LEAKY_SLOPE * e)
        e = jnp.where(adj > 0, e, NEG_INF)
        e = e - jnp.max(e, axis=1, keepdims=True)
        p = jnp.exp(e)
        attn = p / jnp.sum(p, axis=1, keepdims=True)
        y = attn @ h + layer["bias"]
        scale = layer["gamma"] / jnp.sqrt(layer["var"] + EPS)
        y = (y - layer["mean"]) * scale + layer["beta"]
        x = jnp.maximum(y, 0.0)
    h = x @ raw["w1a"] + fair_emb @ raw["w1b"] + raw["b1"]
    h = jnp.maximum(h, 0.0)
    return h @ raw["w2"] + raw["b2"]


# ---------------------------------------------------------------------------
# Deterministic parameter construction + run
# ---------------------------------------------------------------------------
if __name__ == "__main__":
    N = 256              # number of graph nodes (2 dst tiles x 2 src tiles)
    IN_C = 16            # in_channels
    HID = 32             # hidden_channels
    OUT_C = 4            # out_channels
    EMB = 8              # embedding_channels
    NUM_LAYERS = 2

    key = jax.random.PRNGKey(0)
    keys = iter(jax.random.split(key, 64))

    # Inputs
    x = jax.random.normal(next(keys), (N, IN_C), dtype=jnp.float32)
    fair_emb = jax.random.normal(next(keys), (N, EMB), dtype=jnp.float32)
    # Random adjacency (adj_t convention) + self loops (GATConv default)
    adj = (jax.random.uniform(next(keys), (N, N)) < 0.05).astype(jnp.float32)
    adj = jnp.maximum(adj, jnp.eye(N, dtype=jnp.float32))
    adj_i8 = (adj > 0).astype(jnp.int8)          # int8 adjacency stream (4x less HBM)

    # Raw (unfolded) parameters — also used by the module-semantics reference
    convs = []
    fin = IN_C
    for _ in range(NUM_LAYERS):
        w = jax.random.normal(next(keys), (fin, HID), jnp.float32) / jnp.sqrt(float(fin))
        att_src = jax.random.normal(next(keys), (HID, 1), jnp.float32) / jnp.sqrt(float(HID))
        att_dst = jax.random.normal(next(keys), (HID, 1), jnp.float32) / jnp.sqrt(float(HID))
        bias = 0.01 * jax.random.normal(next(keys), (1, HID), jnp.float32)
        gamma = 1.0 + 0.1 * jax.random.normal(next(keys), (1, HID), jnp.float32)
        beta = 0.1 * jax.random.normal(next(keys), (1, HID), jnp.float32)
        convs.append(dict(w=w, att_src=att_src, att_dst=att_dst, bias=bias,
                          gamma=gamma, beta=beta,
                          mean=jnp.zeros((1, HID), jnp.float32),
                          var=jnp.ones((1, HID), jnp.float32)))
        fin = HID  # heads * hidden_channels with heads=1

    w1 = jax.random.normal(next(keys), (HID + EMB, HID), jnp.float32) / jnp.sqrt(float(HID + EMB))
    b1 = 0.01 * jax.random.normal(next(keys), (1, HID), jnp.float32)
    w2 = jax.random.normal(next(keys), (HID, OUT_C), jnp.float32) / jnp.sqrt(float(HID))
    b2 = 0.01 * jax.random.normal(next(keys), (1, OUT_C), jnp.float32)

    raw_params = dict(convs=convs, w1a=w1[:HID], w1b=w1[HID:], b1=b1, w2=w2, b2=b2)

    # Host-side precompute: fold bias+BN, fold attention projection, bf16 weights
    folded = fold_params(raw_params)

    out = fair_gat_forward(x, adj_i8, fair_emb, folded)
    out = jax.block_until_ready(out)
    assert out.shape == (N, OUT_C), out.shape
    assert bool(jnp.all(jnp.isfinite(out)))

    # Tight check vs. a reference that mirrors the kernel math (bf16 MXU operands)
    ref_kernel_math = fair_gat_kernel_math_reference(x, adj_i8, fair_emb, folded)
    assert jnp.allclose(out, ref_kernel_math, atol=2e-2, rtol=2e-2), \
        "mismatch vs kernel-math reference"

    # Loose sanity check vs. exact f32 module semantics (tolerance set by bf16 MXU)
    ref_module = fair_gat_module_reference(x, adj, fair_emb, raw_params)
    assert jnp.allclose(out, ref_module, atol=1e-1, rtol=1e-1), \
        "mismatch vs f32 module reference"

    print("KERNEL_OK")
</pallas_src>

<mosaic_0001>
module attributes {stable_mosaic.version = 11 : i64} {
  func.func @_proj_kernel(%arg0: i32, %arg1: memref<128x16xf32, #tpu.memory_space<vmem>>, %arg2: memref<16x32xbf16, #tpu.memory_space<vmem>>, %arg3: memref<16x2xbf16, #tpu.memory_space<vmem>>, %arg4: memref<128x32xbf16, #tpu.memory_space<vmem>>, %arg5: memref<1x128xf32, #tpu.memory_space<vmem>>, %arg6: memref<128x1xf32, #tpu.memory_space<vmem>>) attributes {dimension_semantics = [#tpu.dimension_semantics<parallel>], iteration_bounds = array<i64: 2>, scalar_prefetch = 0 : i64, scratch_operands = 0 : i64, tpu.core_type = #tpu.core_type<tc>, window_params = [{transform_indices = @transform_0, window_bounds = array<i64: 128, 16>}, {pipeline_mode = #tpu.pipeline_mode<synchronous>, transform_indices = @transform_1, window_bounds = array<i64: 16, 32>}, {pipeline_mode = #tpu.pipeline_mode<synchronous>, transform_indices = @transform_2, window_bounds = array<i64: 16, 2>}, {transform_indices = @transform_3, window_bounds = array<i64: 128, 32>}, {transform_indices = @transform_4, window_bounds = array<i64: 1, 128>}, {transform_indices = @transform_5, window_bounds = array<i64: 128, 1>}]} {
    %c0 = arith.constant 0 : index
    %c0_0 = arith.constant 0 : index
    %0 = vector.load %arg1[%c0, %c0_0] : memref<128x16xf32, #tpu.memory_space<vmem>>, vector<128x16xf32>
    %1 = arith.truncf %0 : vector<128x16xf32> to vector<128x16xbf16>
    %c0_1 = arith.constant 0 : index
    %c0_2 = arith.constant 0 : index
    %2 = vector.load %arg2[%c0_1, %c0_2] : memref<16x32xbf16, #tpu.memory_space<vmem>>, vector<16x32xbf16>
    %cst = arith.constant dense<0.000000e+00> : vector<128x32xf32>
    %3 = tpu.matmul %1, %2, %cst {dimension_numbers = #tpu.dot_dimension_numbers<[1], [0], [0], [1], [0, 0, 1, 1], [], []>} : vector<128x16xbf16>, vector<16x32xbf16>, vector<128x32xf32> -> vector<128x32xf32>
    %c0_3 = arith.constant 0 : index
    %c0_4 = arith.constant 0 : index
    %4 = vector.load %arg3[%c0_3, %c0_4] : memref<16x2xbf16, #tpu.memory_space<vmem>>, vector<16x2xbf16>
    %cst_5 = arith.constant dense<0.000000e+00> : vector<128x2xf32>
    %5 = tpu.matmul %1, %4, %cst_5 {dimension_numbers = #tpu.dot_dimension_numbers<[1], [0], [0], [1], [0, 0, 1, 1], [], []>} : vector<128x16xbf16>, vector<16x2xbf16>, vector<128x2xf32> -> vector<128x2xf32>
    %6 = arith.truncf %3 : vector<128x32xf32> to vector<128x32xbf16>
    %c0_6 = arith.constant 0 : index
    %c0_7 = arith.constant 0 : index
    %7 = vector.load %arg4[%c0_6, %c0_7] : memref<128x32xbf16, #tpu.memory_space<vmem>>, vector<128x32xbf16>
    tpu.vector_store %arg4[%c0_6, %c0_7], %6 {strides = array<i32>} : memref<128x32xbf16, #tpu.memory_space<vmem>>, vector<128x32xbf16>,
    %8 = vector.extract_strided_slice %5 {offsets = [0, 0], sizes = [128, 1], strides = [1, 1]} : vector<128x2xf32> to vector<128x1xf32>
    %9 = tpu.transpose %8, [1, 0] : vector<128x1xf32> -> vector<1x128xf32>
    %c0_8 = arith.constant 0 : index
    %c0_9 = arith.constant 0 : index
    %10 = vector.load %arg5[%c0_8, %c0_9] : memref<1x128xf32, #tpu.memory_space<vmem>>, vector<1x128xf32>
    tpu.vector_store %arg5[%c0_8, %c0_9], %9 {strides = array<i32>} : memref<1x128xf32, #tpu.memory_space<vmem>>, vector<1x128xf32>,
    %11 = vector.extract_strided_slice %5 {offsets = [0, 1], sizes = [128, 1], strides = [1, 1]} : vector<128x2xf32> to vector<128x1xf32>
    %c0_10 = arith.constant 0 : index
    %c0_11 = arith.constant 0 : index
    %12 = vector.load %arg6[%c0_10, %c0_11] : memref<128x1xf32, #tpu.memory_space<vmem>>, vector<128x1xf32>
    tpu.vector_store %arg6[%c0_10, %c0_11], %11 {strides = array<i32>} : memref<128x1xf32, #tpu.memory_space<vmem>>, vector<128x1xf32>,
    return
  }
  func.func @transform_0(%arg0: i32) -> (i32, i32) {
    %c0_i32 = arith.constant 0 : i32
    %c0_i32_0 = arith.constant 0 : i32
    return %arg0, %c0_i32 : i32, i32
  }
  func.func @transform_1(%arg0: i32) -> (i32, i32) {
    %c0_i32 = arith.constant 0 : i32
    %c0_i32_0 = arith.constant 0 : i32
    %c0_i32_1 = arith.constant 0 : i32
    return %c0_i32, %c0_i32_0 : i32, i32
  }
  func.func @transform_2(%arg0: i32) -> (i32, i32) {
    %c0_i32 = arith.constant 0 : i32
    %c0_i32_0 = arith.constant 0 : i32
    %c0_i32_1 = arith.constant 0 : i32
    return %c0_i32, %c0_i32_0 : i32, i32
  }
  func.func @transform_3(%arg0: i32) -> (i32, i32) {
    %c0_i32 = arith.constant 0 : i32
    %c0_i32_0 = arith.constant 0 : i32
    return %arg0, %c0_i32 : i32, i32
  }
  func.func @transform_4(%arg0: i32) -> (i32, i32) {
    %c0_i32 = arith.constant 0 : i32
    %c0_i32_0 = arith.constant 0 : i32
    return %c0_i32, %arg0 : i32, i32
  }
  func.func @transform_5(%arg0: i32) -> (i32, i32) {
    %c0_i32 = arith.constant 0 : i32
    %c0_i32_0 = arith.constant 0 : i32
    return %arg0, %c0_i32 : i32, i32
  }
}

</mosaic_0001>

<bundles_post_ra>
// kernel: tpu_custom_call.1
= control target key start
LH: loop header
LB: loop body
LE: loop exit
PB: predicated region body
PF: predicated region fallthrough
CT: control target
= control target key end

     0   :  { %11 = vsyncpa [#allocation3], 0  ;;  %s1338_s0 = inlined_call_operand.vmem [shape: f32[256,16], index: 0, kind: input, shape index: {}]   ;;  %s1339_s1 = inlined_call_operand.vmem [shape: bf16[16,32], index: 1, kind: input, shape index: {}]   ;;  %s1340_s2 = inlined_call_operand.vmem [shape: bf16[16,2], index: 2, kind: input, shape index: {}]   ;;  %s1341_s3 = inlined_call_operand.vmem [shape: bf16[256,32], index: 3, kind: output, shape index: {0}]   ;;  %s1342_s4 = inlined_call_operand.hbm [shape: f32[1,256], index: 4, kind: output, shape index: {1}]   ;;  %s1343_s5 = inlined_call_operand.vmem [shape: f32[256,1], index: 5, kind: output, shape index: {2}]  }
   0x1   :  { %13 = vsyncpa [#allocation3 + $0x1], 0  ;;  %s1097_s18 = smov 0   ;;  %s1099_s19 = smov 0  }
   0x2   :  { %s1101_s20 = smov 0   ;;  %s1103_s21 = smov 0  }
   0x3 LB: > { %s841_s22 = sadd.s32 4294967295, %s1063_s21   ;;  %s842_s23 = sadd.s32 4294967294, %s1063_s21   ;;  %s1063_s21 = sphi %s1103_s21, %s1349_s21   ;;  %s1059_s20 = sphi %s1101_s20, %s1348_s20   ;;  %s1055_s19 = sphi %s1099_s19, %s1347_s19   ;;  %s1051_s18 = sphi %s1097_s18, %s1346_s18  }
   0x4   : > { %s1120_s24 = sadd.s32 1, %s1063_s21   ;;  %s120_s25 = sadd.s32 1, %s1059_s20 }
   0x5   : > { %s117_s26 = ssub.s32 %s1063_s21, %s1120_s24  ;;  %p130_p0 = scmp.ne.s32.totalorder %s1059_s20, %s1055_s19 }
   0x6   : > { %p118_p1 = scmp.eq.s32.totalorder %s117_s26, 0  ;;  %p131_p2 = scmp.eq.s32.totalorder %s841_s22, 1 }
   0x7   : > { %p136_p3 = scmp.ne.s32.totalorder %s1055_s19, %s1051_s18  ;;  %p137_p4 = scmp.eq.s32.totalorder %s842_s23, 1 }
   0x8   : > { %s1130_s27 = scalar_select %p118_p1, %s1059_s20, %s120_s25  }
   0x9   : > { %p1132_p5 = por %p131_p2, %p130_p0  ;;  %p1136_p6 = por %p137_p4, %p136_p3 }
   0xa   : > { %p845_p7 = scmp.ge.s32.totalorder %s1063_s21, 1  ;;  %p196_p8 = scmp.lt.s32.totalorder %s1063_s21, 3 }
   0xc   : > { %p197_p9 = pnand %p845_p7, %p196_p8 }
   0xd   : > { %v999_v0 = vld [vmem:[%s1340_s2] sm:$0xff] (!%p197_p9)   ;;  %s1145_s7 = sshll.u32 (!%p197_p9), %s841_s22, 4  ;;  %vm284_vm0 = vcmask (!%p197_p9), 130048   ;;  %s1065_s15 = smov (!%p197_p9), 127   ;;  %vm575_vm1 = vcmask (!%p197_p9), 257024   ;;  %vm689_vm2 = vcmask (!%p197_p9), 7168  }
   0xe   : > { %200 = sbr.rel (%p197_p9) target bundleno = 427 (0x1ab), region = 32  ;;  %p234_p10 = scmp.lt.s32.totalorder (!%p197_p9), %s1145_s7, 31  ;;  %941 = vmatprep.subr.bf16.mxu1 (!%p197_p9), %v999_v0  ;;  %v1000_v1 = vld [vmem:[%s1339_s1] sm:$0xff] (!%p197_p9)  }
   0xf   : > { %942 = vmatpush3.bf16.msra.mxu1 (!%p197_p9), %v999_v0  ;;  %923 = vmatprep.subr.bf16.mxu0 (!%p197_p9), %v1000_v1  ;;  %s224_s6 = sand.u32 (!%p197_p9), 1, %s1055_s19   ;;  %s1274_s12 = scalar_lea.hbm (!%p197_p9), %s1342_s4, %s1145_s7 }
  0x10   : > { %924 = vmatpush3.bf16.msra.mxu0 (!%p197_p9), %v1000_v1  ;;  %s225_s8 = scalar_lea.vmem (!%p197_p9), [#allocation2], %s224_s6  ;;  %s712_s13 = scalar_lea.sflag (!%p197_p9), [#allocation3], %s224_s6 }
  0x11   : > { %s733_s9 = sshll.u32 (!%p197_p9), %s225_s8, 4  ;;  %s1268_s9 = int_to_ptr.vmem [resolvable:$true] %s733_s9 }
  0x15   : > { %s1152_s10 = scalar_select %p234_p10, %s1145_s7, 31 }
  0x17   : > { %s847_s11 = sshll.u32 %s1152_s10, 3  ;;  %s849_s16 = sshll.u32 %s1152_s10, 2 }
  0x18   : > { %s1160_s14 = scalar_lea.vmem %s1338_s0, %s847_s11  ;;  %s1205_s23 = scalar_lea.vmem %s1341_s3, %s849_s16 }
  0x19   : > { %v252_v2 = vld [vmem:[%s1160_s14] sm:$0xff]  ;;  %v253_v3 = vld [vmem:[%s1160_s14 + $0x8] sm:$0xff]  ;;  %v254_v4 = vld [vmem:[%s1160_s14 + $0x10] sm:$0xff]  ;;  %s1257_s30 = scalar_lea.vmem %s1343_s5, %s847_s11 }
  0x1a   : > { %v268_v5 = vpack.c.bf16 %v253_v3, %v252_v2  ;;  %v255_v6 = vld [vmem:[%s1160_s14 + $0x18] sm:$0xff]  ;;  %v256_v7 = vld [vmem:[%s1160_s14 + $0x20] sm:$0xff]  ;;  %v257_v8 = vld [vmem:[%s1160_s14 + $0x28] sm:$0xff] }
  0x1b   : > { %v269_v9 = vpack.c.bf16 %v255_v6, %v254_v4  ;;  %v270_v10 = vpack.c.bf16 %v257_v8, %v256_v7  ;;  %v258_v11 = vld [vmem:[%s1160_s14 + $0x30] sm:$0xff]  ;;  %v259_v12 = vld [vmem:[%s1160_s14 + $0x38] sm:$0xff]  ;;  %v260_v13 = vld [vmem:[%s1160_s14 + $0x40] sm:$0xff] }
  0x1c   : > { %943 = vmatprep.mubr.msk.bf16.mxu1 %vm284_vm0, %v268_v5  ;;  %925 = vmatprep.mubr.msk.bf16.mxu0 %vm284_vm0, %v268_v5  ;;  %v261_v14 = vld [vmem:[%s1160_s14 + $0x48] sm:$0xff]  ;;  %v271_v15 = vpack.c.bf16 %v259_v12, %v258_v11  ;;  %v262_v17 = vld [vmem:[%s1160_s14 + $0x50] sm:$0xff]  ;;  %v263_v18 = vld [vmem:[%s1160_s14 + $0x58] sm:$0xff] }
  0x1d   : > { %944 = vmatmul.mubr.msk.bf16.vlgmr.msra.gmra.mrb[0].mxu1 %vm284_vm0, %v269_v9  ;;  %926 = vmatmul.mubr.msk.bf16.vlgmr.msra.gmra.mrb[0].mxu0 %vm284_vm0, %v269_v9  ;;  %v272_v16 = vpack.c.bf16 %v261_v14, %v260_v13  ;;  %v264_v19 = vld [vmem:[%s1160_s14 + $0x60] sm:$0xff]  ;;  %v265_v20 = vld [vmem:[%s1160_s14 + $0x68] sm:$0xff]  ;;  %v273_v21 = vpack.c.bf16 %v263_v18, %v262_v17  ;;  %v266_v23 = vld [vmem:[%s1160_s14 + $0x70] sm:$0xff] }
  0x1e   : > { %947 = vmatprep.mubr.msk.bf16.mxu1 %vm284_vm0, %v270_v10  ;;  %929 = vmatprep.mubr.msk.bf16.mxu0 %vm284_vm0, %v270_v10  ;;  %v274_v22 = vpack.c.bf16 %v265_v20, %v264_v19  ;;  %v267_v24 = vld [vmem:[%s1160_s14 + $0x78] sm:$0xff]  ;;  %s1001_s14 = scalar_lea.vmem %s1268_s9, 16 }
  0x1f   : > { %v275_v25 = vpack.c.bf16 %v267_v24, %v266_v23  ;;  %p1002_p11 = scmp.ne.s32.totalorder %s1268_s9, %s1001_s14 }
  0x21   : > { %p1003_p12 = pnand %p1002_p11, %p1132_p5 }
  0x23   : > { %p1004_p13 = pneg %p1003_p12 }
  0x25   : > { %948 = vmatmul.mubr.msk.bf16.gmra.mrb[4].mxu1 %vm284_vm0, %v271_v15  ;;  %930 = vmatmul.mubr.msk.bf16.gmra.mrb[4].mxu0 %vm284_vm0, %v271_v15 }
  0x26   : > { %951 = vmatprep.mubr.msk.bf16.mxu1 %vm284_vm0, %v272_v16  ;;  %933 = vmatprep.mubr.msk.bf16.mxu0 %vm284_vm0, %v272_v16 }
  0x2d   : > { %952 = vmatmul.mubr.msk.bf16.gmra.mrb[8].mxu1 %vm284_vm0, %v273_v21  ;;  %934 = vmatmul.mubr.msk.bf16.gmra.mrb[8].mxu0 %vm284_vm0, %v273_v21 }
  0x2e   : > { %955 = vmatprep.mubr.msk.bf16.mxu1 %vm284_vm0, %v274_v22  ;;  %937 = vmatprep.mubr.msk.bf16.mxu0 %vm284_vm0, %v274_v22 }
  0x35   : > { %956 = vmatmul.mubr.msk.bf16.gmra.mrb[12].mxu1 %vm284_vm0, %v275_v25  ;;  %938 = vmatmul.mubr.msk.bf16.gmra.mrb[12].mxu0 %vm284_vm0, %v275_v25 }
  0xf0   : > { %v945_v26 = vpop.f32.mrb[0].mxu1  ;;  %v927_v34 = vpop.f32.mrb[0].mxu0 }
  0xf1   : > { %645 = vrot.lane.b32.xlu1 %v945_v26, %s1065_s15  ;;  %v448_v27 = vpop.f32.mrb[1].mxu1  ;;  %v891_v36 = vpack.c.bf16 %v927_v34, %v927_v34  ;;  %v343_v37 = vpop.f32.mrb[1].mxu0 }
  0xf2   : > { %592 = vxpose.xlu0.b32.start [1/16] (narrow) %v448_v27, 8  ;;  %v946_v28 = vpop.f32.mrb[2].mxu1  ;;  %v889_v39 = vpack.c.bf16 %v343_v37, %v343_v37  ;;  %v928_v40 = vpop.f32.mrb[2].mxu0 }
  0xf3   : > { %v451_v29 = vpop.f32.mrb[3].mxu1  ;;  %578 = vst.msk [vmem:[%s1205_s23 + $0x8] sm:$0xf] %vm575_vm1, %v891_v36  ;;  %v892_v42 = vpack.c.bf16 %v928_v40, %v928_v40  ;;  %v346_v43 = vpop.f32.mrb[3].mxu0 }
  0xf4   : > { %576 = vst.msk [vmem:[%s1205_s23] sm:$0xf] %vm575_vm1, %v889_v39  ;;  %v890_v45 = vpack.c.bf16 %v346_v43, %v346_v43 }
  0xf5   : > { %641 = vrot.lane.b32.xlu1 %v448_v27, %s1065_s15  ;;  %579 = vst.msk [vmem:[%s1205_s23 + $0xc] sm:$0xf] %vm575_vm1, %v892_v42 }
  0xf6   : > { %593 = vxpose.xlu0.b32.cont [2/16] (narrow) %v451_v29, 8  ;;  %577 = vst.msk [vmem:[%s1205_s23 + $0x4] sm:$0xf] %vm575_vm1, %v890_v45 }
  0xf8   : > { %v949_v30 = vpop.f32.mrb[4].mxu1  ;;  %v931_v46 = vpop.f32.mrb[4].mxu0 }
  0xf9   : > { %647 = vrot.lane.b32.xlu1 %v946_v28, %s1065_s15  ;;  %v464_v31 = vpop.f32.mrb[5].mxu1  ;;  %v895_v48 = vpack.c.bf16 %v931_v46, %v931_v46  ;;  %v359_v49 = vpop.f32.mrb[5].mxu0 }
  0xfa   : > { %594 = vxpose.xlu0.b32.cont [3/16] (narrow) %v945_v26, 8  ;;  %v950_v32 = vpop.f32.mrb[6].mxu1  ;;  %v893_v51 = vpack.c.bf16 %v359_v49, %v359_v49  ;;  %v932_v52 = vpop.f32.mrb[6].mxu0 }
  0xfb   : > { %v467_v33 = vpop.f32.mrb[7].mxu1  ;;  %582 = vst.msk [vmem:[%s1205_s23 + $0x18] sm:$0xf] %vm575_vm1, %v895_v48  ;;  %v896_v54 = vpack.c.bf16 %v932_v52, %v932_v52  ;;  %v362_v55 = vpop.f32.mrb[7].mxu0 }
  0xfc   : > { %580 = vst.msk [vmem:[%s1205_s23 + $0x10] sm:$0xf] %vm575_vm1, %v893_v51  ;;  %v894_v57 = vpack.c.bf16 %v362_v55, %v362_v55 }
  0xfd   : > { %643 = vrot.lane.b32.xlu1 %v451_v29, %s1065_s15  ;;  %583 = vst.msk [vmem:[%s1205_s23 + $0x1c] sm:$0xf] %vm575_vm1, %v896_v54 }
  0xfe   : > { %595 = vxpose.xlu0.b32.cont [4/16] (narrow) %v946_v28, 8  ;;  %581 = vst.msk [vmem:[%s1205_s23 + $0x14] sm:$0xf] %vm575_vm1, %v894_v57 }
 0x100   : > { %v1198_v35 = vpop.f32.mrb[8].mxu1  ;;  %v935_v58 = vpop.f32.mrb[8].mxu0 }
 0x101   : > { %653 = vrot.lane.b32.xlu1 %v949_v30, %s1065_s15  ;;  %v480_v38 = vpop.f32.mrb[9].mxu1  ;;  %v899_v59 = vpack.c.bf16 %v935_v58, %v935_v58  ;;  %v375_v60 = vpop.f32.mrb[9].mxu0 }
 0x102   : > { %596 = vxpose.xlu0.b32.cont [5/16] (narrow) %v464_v31, 8  ;;  %v954_v41 = vpop.f32.mrb[10].mxu1  ;;  %v897_v61 = vpack.c.bf16 %v375_v60, %v375_v60  ;;  %v936_v62 = vpop.f32.mrb[10].mxu0 }
 0x103   : > { %v483_v44 = vpop.f32.mrb[11].mxu1  ;;  %586 = vst.msk [vmem:[%s1205_s23 + $0x28] sm:$0xf] %vm575_vm1, %v899_v59  ;;  %v900_v63 = vpack.c.bf16 %v936_v62, %v936_v62  ;;  %v378_v0 = vpop.f32.mrb[11].mxu0 }
 0x104   : > { %584 = vst.msk [vmem:[%s1205_s23 + $0x20] sm:$0xf] %vm575_vm1, %v897_v61  ;;  %v898_v1 = vpack.c.bf16 %v378_v0, %v378_v0 }
 0x105   : > { %649 = vrot.lane.b32.xlu1 %v464_v31, %s1065_s15  ;;  %587 = vst.msk [vmem:[%s1205_s23 + $0x2c] sm:$0xf] %vm575_vm1, %v900_v63 }
 0x106   : > { %597 = vxpose.xlu0.b32.cont [6/16] (narrow) %v467_v33, 8  ;;  %585 = vst.msk [vmem:[%s1205_s23 + $0x24] sm:$0xf] %vm575_vm1, %v898_v1 }
 0x108   : > { %v957_v47 = vpop.f32.mrb[12].mxu1  ;;  %v939_v2 = vpop.f32.mrb[12].mxu0 }
 0x109   : > { %655 = vrot.lane.b32.xlu1 %v950_v32, %s1065_s15  ;;  %v496_v50 = vpop.f32.mrb[13].mxu1  ;;  %v903_v3 = vpack.c.bf16 %v939_v2, %v939_v2  ;;  %v391_v4 = vpop.f32.mrb[13].mxu0 }
 0x10a   : > { %598 = vxpose.xlu0.b32.cont [7/16] (narrow) %v949_v30, 8  ;;  %v958_v53 = vpop.f32.mrb[14].mxu1  ;;  %v901_v5 = vpack.c.bf16 %v391_v4, %v391_v4  ;;  %v940_v6 = vpop.f32.mrb[14].mxu0 }
 0x10b   : > { %v499_v56 = vpop.f32.mrb[15].mxu1  ;;  %590 = vst.msk [vmem:[%s1205_s23 + $0x38] sm:$0xf] %vm575_vm1, %v903_v3  ;;  %v904_v7 = vpack.c.bf16 %v940_v6, %v940_v6  ;;  %v394_v8 = vpop.f32.mrb[15].mxu0 }
 0x10c   : > { %588 = vst.msk [vmem:[%s1205_s23 + $0x30] sm:$0xf] %vm575_vm1, %v901_v5  ;;  %v902_v9 = vpack.c.bf16 %v394_v8, %v394_v8 }
 0x10d   : > { %651 = vrot.lane.b32.xlu1 %v467_v33, %s1065_s15  ;;  %591 = vst.msk [vmem:[%s1205_s23 + $0x3c] sm:$0xf] %vm575_vm1, %v904_v7 }
 0x10e   : > { %599 = vxpose.xlu0.b32.cont [8/16] (narrow) %v950_v32, 8  ;;  %589 = vst.msk [vmem:[%s1205_s23 + $0x34] sm:$0xf] %vm575_vm1, %v902_v9 }
 0x111   : > { %661 = vrot.lane.b32.xlu1 %v1198_v35, %s1065_s15 }
 0x112   : > { %600 = vxpose.xlu0.b32.cont [9/16] (narrow) %v480_v38, 8 }
 0x115   : > { %657 = vrot.lane.b32.xlu1 %v480_v38, %s1065_s15 }
 0x116   : > { %601 = vxpose.xlu0.b32.cont [10/16] (narrow) %v483_v44, 8 }
 0x119   : > { %663 = vrot.lane.b32.xlu1 %v954_v41, %s1065_s15 }
 0x11a   : > { %602 = vxpose.xlu0.b32.cont [11/16] (narrow) %v1198_v35, 8 }
 0x11d   : > { %659 = vrot.lane.b32.xlu1 %v483_v44, %s1065_s15 }
 0x11e   : > { %603 = vxpose.xlu0.b32.cont [12/16] (narrow) %v954_v41, 8 }
 0x121   : > { %669 = vrot.lane.b32.xlu1 %v957_v47, %s1065_s15 }
 0x122   : > { %604 = vxpose.xlu0.b32.cont [13/16] (narrow) %v496_v50, 8 }
 0x125   : > { %665 = vrot.lane.b32.xlu1 %v496_v50, %s1065_s15 }
 0x126   : > { %605 = vxpose.xlu0.b32.cont [14/16] (narrow) %v499_v56, 8 }
 0x129   : > { %667 = vrot.lane.b32.xlu1 %v499_v56, %s1065_s15 }
 0x12a   : > { %606 = vxpose.xlu0.b32.cont [15/16] (narrow) %v957_v47, 8 }
 0x12d   : > { %671 = vrot.lane.b32.xlu1 %v958_v53, %s1065_s15  ;;  %s1066_s15 = smov [#allocation2]  }
 0x12e   : > { %607 = vxpose.xlu0.b32.end [16/16] (narrow) %v958_v53, 8  ;;  %s1005_s16 = sshll.u32 %s1066_s15, 4  ;;  %s1006_s16 = int_to_ptr.vmem [resolvable:$false] %s1005_s16 }
 0x12f   : > { %s1007_s17 = scalar_lea.vmem %s1006_s16, 32  ;;  %p1008_p0 = scmp.lt.s32.totalorder %s1268_s9, %s1006_s16 }
 0x130   : > { %p1009_p1 = scmp.lt.s32.totalorder %s1007_s17, %s1001_s14 }
 0x132   : > { %p1010_p2 = por %p1009_p1, %p1008_p0 }
 0x134   : > { %p1011_p3 = pnand %p1010_p2, %p1004_p13 }
 0x163   : > { %v646_v10 = vpop.permute.xlu1 %645 }
 0x164   : > { %692 = vst.msk [vmem:[%s1257_s30 + $0x10] sm:$0xff] %vm689_vm2, %v646_v10 }
 0x167   : > { %v642_v11 = vpop.permute.xlu1 %641 }
 0x168   : > { %690 = vst.msk [vmem:[%s1257_s30] sm:$0xff] %vm689_vm2, %v642_v11 }
 0x16b   : > { %v648_v12 = vpop.permute.xlu1 %647 }
 0x16c   : > { %693 = vst.msk [vmem:[%s1257_s30 + $0x18] sm:$0xff] %vm689_vm2, %v648_v12 }
 0x16f   : > { %v644_v13 = vpop.permute.xlu1 %643 }
 0x170   : > { %691 = vst.msk [vmem:[%s1257_s30 + $0x8] sm:$0xff] %vm689_vm2, %v644_v13 }
 0x172   : > { %v608_v14 = vpop.trf.xlu0 }
 0x173   : > { %v654_v15 = vpop.permute.xlu1 %653  ;;  %624 = vst [vmem:[%s225_s8] sm:$0x1] %v608_v14 }
 0x174   : > { %696 = vst.msk [vmem:[%s1257_s30 + $0x30] sm:$0xff] %vm689_vm2, %v654_v15 }
 0x175   : > { %1014 = shalt.err (!%p1011_p3)
}
 0x176   : > { %s1015_s7 = scalar_lea.hbm %s1274_s12, 16  ;;  %s1019_s25 = scalar_lea.hbm %s1342_s4, 32 }
 0x177   : > { %p1016_p4 = scmp.ne.s32.totalorder %s1274_s12, %s1015_s7  ;;  %p1020_p9 = scmp.lt.u32.totalorder %s1274_s12, %s1342_s4 }
 0x178   : > { %p1021_p10 = scmp.lt.u32.totalorder %s1019_s25, %s1015_s7  ;;  %p1023_p12 = scmp.lt.u32.totalorder %s1015_s7, %s1274_s12 }
 0x179   : > { %p1017_p7 = pnand %p1016_p4, %p1132_p5 }
 0x17a   : > { %p1022_p11 = por %p1021_p10, %p1020_p9 }
 0x17b   : > { %p1018_p8 = pneg %p1017_p7 }
 0x17c   : > { %p1024_p13 = por %p1023_p12, %p1022_p11 }
 0x17e   : > { %p1025_p0 = pnand %p1024_p13, %p1018_p8 }
 0x180   : > { %1028 = shalt.err (!%p1025_p0)
}
 0x181   : > { %959 = dma.vmem_to_hbm [thread:$0]  (%p1132_p5), %s1268_s9, 16, %s1274_s12, %s712_s13   ;;  %v650_v16 = vpop.permute.xlu1 %649 }
 0x182   : > { %694 = vst.msk [vmem:[%s1257_s30 + $0x20] sm:$0xff] %vm689_vm2, %v650_v16 }
 0x185   : > { %v656_v17 = vpop.permute.xlu1 %655 }
 0x186   : > { %697 = vst.msk [vmem:[%s1257_s30 + $0x38] sm:$0xff] %vm689_vm2, %v656_v17 }
 0x189   : > { %v652_v18 = vpop.permute.xlu1 %651 }
 0x18a   : > { %695 = vst.msk [vmem:[%s1257_s30 + $0x28] sm:$0xff] %vm689_vm2, %v652_v18 }
 0x18d   : > { %v662_v19 = vpop.permute.xlu1 %661 }
 0x18e   : > { %700 = vst.msk [vmem:[%s1257_s30 + $0x50] sm:$0xff] %vm689_vm2, %v662_v19 }
 0x191   : > { %v658_v20 = vpop.permute.xlu1 %657 }
 0x192   : > { %698 = vst.msk [vmem:[%s1257_s30 + $0x40] sm:$0xff] %vm689_vm2, %v658_v20 }
 0x195   : > { %v664_v21 = vpop.permute.xlu1 %663 }
 0x196   : > { %701 = vst.msk [vmem:[%s1257_s30 + $0x58] sm:$0xff] %vm689_vm2, %v664_v21 }
 0x199   : > { %v660_v22 = vpop.permute.xlu1 %659 }
 0x19a   : > { %699 = vst.msk [vmem:[%s1257_s30 + $0x48] sm:$0xff] %vm689_vm2, %v660_v22 }
 0x19d   : > { %v670_v23 = vpop.permute.xlu1 %669 }
 0x19e   : > { %704 = vst.msk [vmem:[%s1257_s30 + $0x70] sm:$0xff] %vm689_vm2, %v670_v23 }
 0x1a1   : > { %v666_v24 = vpop.permute.xlu1 %665 }
 0x1a2   : > { %702 = vst.msk [vmem:[%s1257_s30 + $0x60] sm:$0xff] %vm689_vm2, %v666_v24 }
 0x1a5   : > { %v668_v25 = vpop.permute.xlu1 %667 }
 0x1a6   : > { %703 = vst.msk [vmem:[%s1257_s30 + $0x68] sm:$0xff] %vm689_vm2, %v668_v25 }
 0x1a9   : > { %v672_v26 = vpop.permute.xlu1 %671 }
 0x1aa   : > { %705 = vst.msk [vmem:[%s1257_s30 + $0x78] sm:$0xff] %vm689_vm2, %v672_v26 }
 0x1ab PF: > { %p965_p5 = scmp.ge.s32.totalorder %s1063_s21, 2  ;;  %s757_s28 = sand.u32 1, %s1051_s18  }
 0x1ac   : > { %s758_s8 = scalar_lea.sflag [#allocation3], %s757_s28 }
 0x1ad   : > { %p962_p1 = pnand %p965_p5, %p1136_p6 }
 0x1af   : > { %1046 = dma.done.wait (!%p962_p1), %s758_s8, 16  }
 0x1b0   : > { %1048 = vsyncadd (!%p962_p1), %s758_s8, 4294967280  ;;  %p16_p2 = scmp.ge.s32.totalorder %s1120_s24, 4   ;;  %s1346_s18 = smov %s1055_s19 }
 0x1b1   : > { %s1347_s19 = smov %s1059_s20  ;;  %s1348_s20 = smov %s1130_s27 }
 0x1b2   : > { %s1349_s21 = smov %s1120_s24  ;;  %18 = sbr.rel (!%p16_p2) target bundleno = 3 (0x3), region = 91 }
 0x1b9   :  { %770 = vsyncpa [#allocation3], 1 }
 0x1ba   :  { %772 = vsyncpa [#allocation3 + $0x1], 1 }

</bundles_post_ra>
